<compile_context>
chip_gen: v7x
topology: tpu7x:2x2x1
jax: 0.10.0
libtpu: 0.0.40
codegen_flags: <defaults>
</compile_context>

<pallas_src>
import jax
import jax.numpy as jnp
from jax.experimental import pallas as pl
from jax.experimental.pallas import tpu as pltpu

_LANES = 128        # on-chip padded class width (full lane width)
_SUB = 16           # sublane multiple satisfying both f32 (8) and bf16 (16)
_NEG_BIAS = -1e30   # exp(-1e30 - m) underflows to exactly 0.0 in f32


def _round_up(n, m):
    return ((n + m - 1) // m) * m


def _classifier_kernel(x_ref, w1_ref, b1_ref, w2_ref, b2_ref, w3_ref, b3_ref,
                       o_ref):
    # dtype-generic: use bf16 input directly, cast f32 input on-chip.
    x = x_ref[...]
    if x.dtype != jnp.bfloat16:
        x = x.astype(jnp.bfloat16)

    # Linear(384 -> 256) + ReLU   (dropout = identity at inference)
    h1 = jnp.dot(x, w1_ref[...], preferred_element_type=jnp.float32)
    h1 = jnp.maximum(h1 + b1_ref[...], 0.0)

    # Linear(256 -> 128) + ReLU   (dropout = identity at inference)
    h2 = jnp.dot(h1.astype(jnp.bfloat16), w2_ref[...],
                 preferred_element_type=jnp.float32)
    h2 = jnp.maximum(h2 + b2_ref[...], 0.0)

    # Linear(128 -> 128 padded classes); padded columns get -1e30 bias.
    logits = jnp.dot(h2.astype(jnp.bfloat16), w3_ref[...],
                     preferred_element_type=jnp.float32)
    logits = logits + b3_ref[...]

    # Softmax over the full-lane-width padded class axis (stays in VMEM/vregs;
    # padded columns contribute exactly 0 after exp).
    m = jnp.max(logits, axis=-1, keepdims=True)
    e = jnp.exp(logits - m)
    s = jnp.sum(e, axis=-1, keepdims=True)
    probs = e / s

    # Only the narrow (real + small pad) class slab goes back to HBM.
    o_ref[...] = probs[:, : o_ref.shape[-1]].astype(o_ref.dtype)


def query_classifier_forward(x, params, *, block_batch=1024):
    """x: (B, embedding_dim) f32 or bf16. Returns (B, num_classes) f32 probs."""
    w1, b1, w2, b2, w3, b3 = params
    B, D = x.shape
    H1 = w1.shape[1]
    H2 = w2.shape[1]
    C = w3.shape[1]
    assert C <= _LANES
    CP = _LANES                        # on-chip padded class width
    CO = max(8, _round_up(C, 8))       # narrow class width written to HBM

    # --- prepare weights: pad class axis, cast matmul operands to bf16 ---
    w3p = jnp.zeros((w3.shape[0], CP), w3.dtype).at[:, :C].set(w3)
    b3p = jnp.full((1, CP), _NEG_BIAS, jnp.float32).at[:, :C].set(
        jnp.reshape(b3, (1, C)).astype(jnp.float32))

    w1b = w1.astype(jnp.bfloat16)
    w2b = w2.astype(jnp.bfloat16)
    w3b = w3p.astype(jnp.bfloat16)
    b1f = jnp.reshape(b1, (1, H1)).astype(jnp.float32)
    b2f = jnp.reshape(b2, (1, H2)).astype(jnp.float32)

    # --- batch tiling: round B only to the sublane multiple, then split into
    # near-equal tiles; build >= 2 tiles when possible so v7x megacore can
    # shard the "parallel" batch axis across both TensorCores. ---
    Bp = _round_up(B, _SUB)
    nb = max(pl.cdiv(Bp, block_batch), 2 if Bp >= 2 * _SUB else 1)
    TB = _round_up(pl.cdiv(Bp, nb), _SUB)
    nb = pl.cdiv(Bp, TB)
    Bp = nb * TB
    if Bp != B:
        x = jnp.pad(x, ((0, Bp - B), (0, 0)))

    in_bytes = x.dtype.itemsize

    # Advisory cost estimate for the XLA scheduler (reflects narrow output).
    flops = 2 * Bp * (D * H1 + H1 * H2 + H2 * CP)
    bytes_accessed = (Bp * D * in_bytes                            # input read
                      + 2 * (w1b.size + w2b.size + w3b.size)       # bf16 weights
                      + 4 * (b1f.size + b2f.size + b3p.size)       # f32 biases
                      + Bp * CO * 4)                               # narrow output
    cost = pl.CostEstimate(flops=flops,
                           transcendentals=Bp * CP,
                           bytes_accessed=bytes_accessed)

    compiler_kwargs = dict(dimension_semantics=("parallel",))
    if TB > 1024:
        # v5e's default scoped VMEM is 16 MiB; give explicit headroom for the
        # double-buffered tiles + resident weights + f32 intermediates.
        est = (2 * TB * D * in_bytes                 # input tiles (x2 buffers)
               + 2 * TB * CO * 4                     # output tiles (x2 buffers)
               + 2 * (w1b.size + w2b.size + w3b.size)
               + 4 * (b1f.size + b2f.size + b3p.size)
               + 4 * TB * (H1 + H2 + 2 * CP))        # h1/h2/logits/e
        compiler_kwargs["vmem_limit_bytes"] = min(int(est * 1.5), 56 << 20)

    out = pl.pallas_call(
        _classifier_kernel,
        out_shape=jax.ShapeDtypeStruct((Bp, CO), jnp.float32),
        grid=(nb,),
        in_specs=[
            pl.BlockSpec((TB, D), lambda i: (i, 0)),      # batch-tiled input
            pl.BlockSpec(w1b.shape, lambda i: (0, 0)),    # resident weights
            pl.BlockSpec(b1f.shape, lambda i: (0, 0)),
            pl.BlockSpec(w2b.shape, lambda i: (0, 0)),
            pl.BlockSpec(b2f.shape, lambda i: (0, 0)),
            pl.BlockSpec(w3b.shape, lambda i: (0, 0)),
            pl.BlockSpec(b3p.shape, lambda i: (0, 0)),
        ],
        out_specs=pl.BlockSpec((TB, CO), lambda i: (i, 0)),
        compiler_params=pltpu.CompilerParams(**compiler_kwargs),
        cost_estimate=cost,
    )(x, w1b, b1f, w2b, b2f, w3b, b3p)

    # Tiny slice (CO=8 cols, f32) — negligible traffic vs. the old 128-wide slab.
    return out[:B, :C]


def init_params(key, embedding_dim=384, num_classes=6):
    """Deterministic PyTorch-style uniform(-1/sqrt(fan_in), 1/sqrt(fan_in)) init."""
    dims = [(embedding_dim, 256), (256, 128), (128, num_classes)]
    params = []
    for (fan_in, fan_out) in dims:
        key, kw, kb = jax.random.split(key, 3)
        bound = 1.0 / jnp.sqrt(fan_in)
        w = jax.random.uniform(kw, (fan_in, fan_out), jnp.float32, -bound, bound)
        b = jax.random.uniform(kb, (1, fan_out), jnp.float32, -bound, bound)
        params.extend([w, b])
    return tuple(params)


def _reference_forward_bf16(x, params):
    """Mirror of the kernel math: bf16 matmul operands, f32 accumulation."""
    w1, b1, w2, b2, w3, b3 = params
    h1 = jnp.maximum(
        jnp.dot(x.astype(jnp.bfloat16), w1.astype(jnp.bfloat16),
                preferred_element_type=jnp.float32) + b1, 0.0)
    h2 = jnp.maximum(
        jnp.dot(h1.astype(jnp.bfloat16), w2.astype(jnp.bfloat16),
                preferred_element_type=jnp.float32) + b2, 0.0)
    logits = jnp.dot(h2.astype(jnp.bfloat16), w3.astype(jnp.bfloat16),
                     preferred_element_type=jnp.float32) + b3
    return jax.nn.softmax(logits, axis=1)


def _reference_forward_f32(x, params):
    w1, b1, w2, b2, w3, b3 = params
    h1 = jnp.maximum(x @ w1 + b1, 0.0)
    h2 = jnp.maximum(h1 @ w2 + b2, 0.0)
    logits = h2 @ w3 + b3
    return jax.nn.softmax(logits, axis=1)


if __name__ == "__main__":
    key = jax.random.PRNGKey(0)
    k_params, k_x = jax.random.split(key)

    embedding_dim, num_classes, batch = 384, 6, 8
    params = init_params(k_params, embedding_dim, num_classes)
    x = jax.random.normal(k_x, (batch, embedding_dim), jnp.float32)

    # f32 input path (single tile).
    out = jax.block_until_ready(query_classifier_forward(x, params))
    assert out.shape == (batch, num_classes)
    ref_bf16 = _reference_forward_bf16(x, params)
    assert jnp.allclose(out, ref_bf16, atol=1e-4, rtol=1e-4)
    ref_f32 = _reference_forward_f32(x, params)
    assert jnp.allclose(out, ref_f32, atol=5e-2)
    assert jnp.allclose(jnp.sum(out, axis=1), 1.0, atol=1e-5)

    # bf16 input path (halved input traffic) with a multi-tile grid + padding.
    x40 = jax.random.normal(jax.random.PRNGKey(1), (40, embedding_dim),
                            jnp.float32).astype(jnp.bfloat16)
    out40 = jax.block_until_ready(query_classifier_forward(x40, params))
    assert out40.shape == (40, num_classes)
    ref40 = _reference_forward_bf16(x40, params)
    assert jnp.allclose(out40, ref40, atol=2e-3, rtol=2e-3)
    assert jnp.allclose(jnp.sum(out40, axis=1), 1.0, atol=1e-5)

    print("KERNEL_OK")
</pallas_src>

<mosaic_0001>
module attributes {stable_mosaic.version = 11 : i64} {
  func.func @_classifier_kernel(%arg0: i32, %arg1: memref<16x384xf32, #tpu.memory_space<vmem>>, %arg2: memref<384x256xbf16, #tpu.memory_space<vmem>>, %arg3: memref<1x256xf32, #tpu.memory_space<vmem>>, %arg4: memref<256x128xbf16, #tpu.memory_space<vmem>>, %arg5: memref<1x128xf32, #tpu.memory_space<vmem>>, %arg6: memref<128x128xbf16, #tpu.memory_space<vmem>>, %arg7: memref<1x128xf32, #tpu.memory_space<vmem>>, %arg8: memref<16x8xf32, #tpu.memory_space<vmem>>) attributes {dimension_semantics = [#tpu.dimension_semantics<parallel>], iteration_bounds = array<i64: 1>, scalar_prefetch = 0 : i64, scratch_operands = 0 : i64, tpu.core_type = #tpu.core_type<tc>, window_params = [{transform_indices = @transform_0, window_bounds = array<i64: 16, 384>}, {pipeline_mode = #tpu.pipeline_mode<synchronous>, transform_indices = @transform_1, window_bounds = array<i64: 384, 256>}, {pipeline_mode = #tpu.pipeline_mode<synchronous>, transform_indices = @transform_2, window_bounds = array<i64: 1, 256>}, {pipeline_mode = #tpu.pipeline_mode<synchronous>, transform_indices = @transform_3, window_bounds = array<i64: 256, 128>}, {pipeline_mode = #tpu.pipeline_mode<synchronous>, transform_indices = @transform_4, window_bounds = array<i64: 1, 128>}, {pipeline_mode = #tpu.pipeline_mode<synchronous>, transform_indices = @transform_5, window_bounds = array<i64: 128, 128>}, {pipeline_mode = #tpu.pipeline_mode<synchronous>, transform_indices = @transform_6, window_bounds = array<i64: 1, 128>}, {transform_indices = @transform_7, window_bounds = array<i64: 16, 8>}]} {
    %c0 = arith.constant 0 : index
    %c0_0 = arith.constant 0 : index
    %0 = vector.load %arg1[%c0, %c0_0] : memref<16x384xf32, #tpu.memory_space<vmem>>, vector<16x384xf32>
    %1 = arith.truncf %0 : vector<16x384xf32> to vector<16x384xbf16>
    %c0_1 = arith.constant 0 : index
    %c0_2 = arith.constant 0 : index
    %2 = vector.load %arg2[%c0_1, %c0_2] : memref<384x256xbf16, #tpu.memory_space<vmem>>, vector<384x256xbf16>
    %cst = arith.constant dense<0.000000e+00> : vector<16x256xf32>
    %3 = tpu.matmul %1, %2, %cst {dimension_numbers = #tpu.dot_dimension_numbers<[1], [0], [0], [1], [0, 0, 1, 1], [], []>} : vector<16x384xbf16>, vector<384x256xbf16>, vector<16x256xf32> -> vector<16x256xf32>
    %c0_3 = arith.constant 0 : index
    %c0_4 = arith.constant 0 : index
    %4 = vector.load %arg3[%c0_3, %c0_4] : memref<1x256xf32, #tpu.memory_space<vmem>>, vector<1x256xf32>
    %5 = vector.broadcast %4 : vector<1x256xf32> to vector<16x256xf32>
    %6 = arith.addf %3, %5 : vector<16x256xf32>
    %cst_5 = arith.constant 0.000000e+00 : f32
    %7 = vector.broadcast %cst_5 : f32 to vector<16x256xf32>
    %8 = arith.maximumf %6, %7 : vector<16x256xf32>
    %9 = arith.truncf %8 : vector<16x256xf32> to vector<16x256xbf16>
    %c0_6 = arith.constant 0 : index
    %c0_7 = arith.constant 0 : index
    %10 = vector.load %arg4[%c0_6, %c0_7] : memref<256x128xbf16, #tpu.memory_space<vmem>>, vector<256x128xbf16>
    %cst_8 = arith.constant dense<0.000000e+00> : vector<16x128xf32>
    %11 = tpu.matmul %9, %10, %cst_8 {dimension_numbers = #tpu.dot_dimension_numbers<[1], [0], [0], [1], [0, 0, 1, 1], [], []>} : vector<16x256xbf16>, vector<256x128xbf16>, vector<16x128xf32> -> vector<16x128xf32>
    %c0_9 = arith.constant 0 : index
    %c0_10 = arith.constant 0 : index
    %12 = vector.load %arg5[%c0_9, %c0_10] : memref<1x128xf32, #tpu.memory_space<vmem>>, vector<1x128xf32>
    %13 = vector.broadcast %12 : vector<1x128xf32> to vector<16x128xf32>
    %14 = arith.addf %11, %13 : vector<16x128xf32>
    %cst_11 = arith.constant 0.000000e+00 : f32
    %15 = vector.broadcast %cst_11 : f32 to vector<16x128xf32>
    %16 = arith.maximumf %14, %15 : vector<16x128xf32>
    %17 = arith.truncf %16 : vector<16x128xf32> to vector<16x128xbf16>
    %c0_12 = arith.constant 0 : index
    %c0_13 = arith.constant 0 : index
    %18 = vector.load %arg6[%c0_12, %c0_13] : memref<128x128xbf16, #tpu.memory_space<vmem>>, vector<128x128xbf16>
    %cst_14 = arith.constant dense<0.000000e+00> : vector<16x128xf32>
    %19 = tpu.matmul %17, %18, %cst_14 {dimension_numbers = #tpu.dot_dimension_numbers<[1], [0], [0], [1], [0, 0, 1, 1], [], []>} : vector<16x128xbf16>, vector<128x128xbf16>, vector<16x128xf32> -> vector<16x128xf32>
    %c0_15 = arith.constant 0 : index
    %c0_16 = arith.constant 0 : index
    %20 = vector.load %arg7[%c0_15, %c0_16] : memref<1x128xf32, #tpu.memory_space<vmem>>, vector<1x128xf32>
    %21 = vector.broadcast %20 : vector<1x128xf32> to vector<16x128xf32>
    %22 = arith.addf %19, %21 : vector<16x128xf32>
    %cst_17 = arith.constant dense<0xFF800000> : vector<16xf32>
    %23 = vector.multi_reduction <maximumf>, %22, %cst_17 [1] : vector<16x128xf32> to vector<16xf32>
    %24 = vector.shape_cast %23 : vector<16xf32> to vector<16x1xf32>
    %25 = vector.broadcast %24 : vector<16x1xf32> to vector<16x128xf32>
    %26 = arith.subf %22, %25 : vector<16x128xf32>
    %27 = math.exp %26 : vector<16x128xf32>
    %cst_18 = arith.constant dense<0.000000e+00> : vector<16xf32>
    %28 = vector.multi_reduction <add>, %27, %cst_18 [1] : vector<16x128xf32> to vector<16xf32>
    %29 = vector.shape_cast %28 : vector<16xf32> to vector<16x1xf32>
    %30 = vector.broadcast %29 : vector<16x1xf32> to vector<16x128xf32>
    %31 = arith.divf %27, %30 : vector<16x128xf32>
    %32 = vector.extract_strided_slice %31 {offsets = [0, 0], sizes = [16, 8], strides = [1, 1]} : vector<16x128xf32> to vector<16x8xf32>
    %c0_19 = arith.constant 0 : index
    %c0_20 = arith.constant 0 : index
    %33 = vector.load %arg8[%c0_19, %c0_20] : memref<16x8xf32, #tpu.memory_space<vmem>>, vector<16x8xf32>
    tpu.vector_store %arg8[%c0_19, %c0_20], %32 {strides = array<i32>} : memref<16x8xf32, #tpu.memory_space<vmem>>, vector<16x8xf32>,
    return
  }
  func.func @transform_0(%arg0: i32) -> (i32, i32) {
    %c0_i32 = arith.constant 0 : i32
    %c0_i32_0 = arith.constant 0 : i32
    return %arg0, %c0_i32 : i32, i32
  }
  func.func @transform_1(%arg0: i32) -> (i32, i32) {
    %c0_i32 = arith.constant 0 : i32
    %c0_i32_0 = arith.constant 0 : i32
    %c0_i32_1 = arith.constant 0 : i32
    return %c0_i32, %c0_i32_0 : i32, i32
  }
  func.func @transform_2(%arg0: i32) -> (i32, i32) {
    %c0_i32 = arith.constant 0 : i32
    %c0_i32_0 = arith.constant 0 : i32
    %c0_i32_1 = arith.constant 0 : i32
    return %c0_i32, %c0_i32_0 : i32, i32
  }
  func.func @transform_3(%arg0: i32) -> (i32, i32) {
    %c0_i32 = arith.constant 0 : i32
    %c0_i32_0 = arith.constant 0 : i32
    %c0_i32_1 = arith.constant 0 : i32
    return %c0_i32, %c0_i32_0 : i32, i32
  }
  func.func @transform_4(%arg0: i32) -> (i32, i32) {
    %c0_i32 = arith.constant 0 : i32
    %c0_i32_0 = arith.constant 0 : i32
    %c0_i32_1 = arith.constant 0 : i32
    return %c0_i32, %c0_i32_0 : i32, i32
  }
  func.func @transform_5(%arg0: i32) -> (i32, i32) {
    %c0_i32 = arith.constant 0 : i32
    %c0_i32_0 = arith.constant 0 : i32
    %c0_i32_1 = arith.constant 0 : i32
    return %c0_i32, %c0_i32_0 : i32, i32
  }
  func.func @transform_6(%arg0: i32) -> (i32, i32) {
    %c0_i32 = arith.constant 0 : i32
    %c0_i32_0 = arith.constant 0 : i32
    %c0_i32_1 = arith.constant 0 : i32
    return %c0_i32, %c0_i32_0 : i32, i32
  }
  func.func @transform_7(%arg0: i32) -> (i32, i32) {
    %c0_i32 = arith.constant 0 : i32
    %c0_i32_0 = arith.constant 0 : i32
    return %arg0, %c0_i32 : i32, i32
  }
}

</mosaic_0001>

<bundles_post_ra>
// kernel: tpu_custom_call.1
= control target key start
LH: loop header
LB: loop body
LE: loop exit
PB: predicated region body
PF: predicated region fallthrough
CT: control target
= control target key end

     0   :  { %12 = vsyncpa [#allocation3], 0  ;;  %s1262_s0 = inlined_call_operand.hbm [shape: f32[16,384], index: 0, kind: input, shape index: {}]   ;;  %s1263_s1 = inlined_call_operand.hbm [shape: bf16[384,256], index: 1, kind: input, shape index: {}]   ;;  %s1264_s2 = inlined_call_operand.vmem [shape: f32[1,256], index: 2, kind: input, shape index: {}]   ;;  %s1265_s3 = inlined_call_operand.hbm [shape: bf16[256,128], index: 3, kind: input, shape index: {}]   ;;  %s1266_s4 = inlined_call_operand.vmem [shape: f32[1,128], index: 4, kind: input, shape index: {}]   ;;  %s1267_s5 = inlined_call_operand.hbm [shape: bf16[128,128], index: 5, kind: input, shape index: {}]   ;;  %s1268_s6 = inlined_call_operand.vmem [shape: f32[1,128], index: 6, kind: input, shape index: {}]   ;;  %s1269_s7 = inlined_call_operand.vmem [shape: f32[16,8], index: 7, kind: output, shape index: {}]  }
   0x1   :  { %13 = vsyncpa [#allocation5], 0 }
   0x2   :  { %14 = vsyncpa [#allocation8], 0  ;;  %s1146_s24 = smov [#allocation4]   ;;  %s1052_s28 = scalar_lea.hbm %s1263_s1, 6144 }
   0x3   :  { %s32_s25 = sshll.u32 %s1146_s24, 4  ;;  %p1053_p0 = scmp.ne.s32.totalorder %s1263_s1, %s1052_s28  ;;  %s33_s25 = int_to_ptr.vmem [resolvable:$true] %s32_s25 }
   0x4   :  { %p1056_p1 = scmp.lt.u32.totalorder %s1052_s28, %s1263_s1 }
   0x6   :  { %p1058_p2 = pnand %p1056_p1, %p1053_p0 }
   0x8   :  { %1061 = shalt.err (!%p1058_p2)
}
   0x9   :  { %s1062_s10 = scalar_lea.vmem %s33_s25, 6144  ;;  %p1067_p4 = scmp.lt.s32.totalorder %s33_s25, %s33_s25 }
   0xa   :  { %p1063_p3 = scmp.ne.s32.totalorder %s33_s25, %s1062_s10  ;;  %p1068_p5 = scmp.lt.s32.totalorder %s1062_s10, %s1062_s10 }
   0xc   :  { %p1069_p6 = por %p1068_p5, %p1067_p4 }
   0xe   :  { %p1070_p7 = pnand %p1069_p6, %p1063_p3 }
  0x10   :  { %1073 = shalt.err (!%p1070_p7)
}
  0x11   :  { %s1147_s11 = smov 128   ;;  %s1148_s12 = smov 8  }
  0x12   :  { %38 = dma.hbm_to_vmem [thread:$0]  %s1263_s1, 6144, %s33_s25, [#allocation5], %s1147_s11, %s1147_s11, %s1148_s12  }
  0x13   :  { %s1149_s15 = smov [#allocation2]   ;;  %s1074_s19 = scalar_lea.hbm %s1262_s0, 768 }
  0x14   :  { %s20_s16 = sshll.u32 %s1149_s15, 4  ;;  %p1075_p8 = scmp.ne.s32.totalorder %s1262_s0, %s1074_s19  ;;  %s21_s16 = int_to_ptr.vmem [resolvable:$true] %s20_s16 }
  0x15   :  { %p1078_p9 = scmp.lt.u32.totalorder %s1074_s19, %s1262_s0 }
  0x17   :  { %p1080_p10 = pnand %p1078_p9, %p1075_p8 }
  0x19   :  { %1083 = shalt.err (!%p1080_p10)
}
  0x1a   :  { %s1084_s24 = scalar_lea.vmem %s21_s16, 768  ;;  %p1089_p12 = scmp.lt.s32.totalorder %s21_s16, %s21_s16 }
  0x1b   :  { %p1085_p11 = scmp.ne.s32.totalorder %s21_s16, %s1084_s24  ;;  %p1090_p13 = scmp.lt.s32.totalorder %s1084_s24, %s1084_s24 }
  0x1d   :  { %p1091_p0 = por %p1090_p13, %p1089_p12 }
  0x1f   :  { %p1092_p1 = pnand %p1091_p0, %p1085_p11 }
  0x21   :  { %1095 = shalt.err (!%p1092_p1)
}
  0x22   :  { %s1150_s1 = smov 384   ;;  %s1151_s25 = smov 24  }
  0x23   :  { %26 = dma.hbm_to_vmem [thread:$0]  %s1262_s0, 768, %s21_s16, [#allocation3], %s1150_s1, %s1150_s1, %s1151_s25  }
  0x24   :  { %s1152_s28 = smov [#allocation6]   ;;  %s1096_s9 = scalar_lea.hbm %s1265_s3, 2048 }
  0x25   :  { %s46_s29 = sshll.u32 %s1152_s28, 4  ;;  %p1097_p2 = scmp.ne.s32.totalorder %s1265_s3, %s1096_s9  ;;  %s47_s29 = int_to_ptr.vmem [resolvable:$true] %s46_s29 }
  0x26   :  { %p1100_p3 = scmp.lt.u32.totalorder %s1096_s9, %s1265_s3 }
  0x28   :  { %p1102_p4 = pnand %p1100_p3, %p1097_p2 }
  0x2a   :  { %1105 = shalt.err (!%p1102_p4)
}
  0x2b   :  { %s1106_s14 = scalar_lea.vmem %s47_s29, 2048  ;;  %p1111_p6 = scmp.lt.s32.totalorder %s47_s29, %s47_s29 }
  0x2c   :  { %p1107_p5 = scmp.ne.s32.totalorder %s47_s29, %s1106_s14  ;;  %p1112_p7 = scmp.lt.s32.totalorder %s1106_s14, %s1106_s14 }
  0x2e   :  { %p1113_p8 = por %p1112_p7, %p1111_p6 }
  0x30   :  { %p1114_p9 = pnand %p1113_p8, %p1107_p5 }
  0x32   :  { %1117 = shalt.err (!%p1114_p9)
}
  0x33   :  { %s1153_s0 = smov 64   ;;  %s1154_s15 = smov 4  }
  0x34   :  { %52 = dma.hbm_to_vmem [thread:$0]  %s1265_s3, 2048, %s47_s29, [#allocation5], %s1153_s0, %s1153_s0, %s1154_s15  }
  0x35   :  { %s1155_s18 = smov [#allocation7]   ;;  %s1118_s22 = scalar_lea.hbm %s1267_s5, 1024 }
  0x36   :  { %s60_s19 = sshll.u32 %s1155_s18, 4  ;;  %p1119_p10 = scmp.ne.s32.totalorder %s1267_s5, %s1118_s22  ;;  %s61_s19 = int_to_ptr.vmem [resolvable:$true] %s60_s19 }
  0x37   :  { %p1122_p11 = scmp.lt.u32.totalorder %s1118_s22, %s1267_s5 }
  0x39   :  { %p1124_p12 = pnand %p1122_p11, %p1119_p10 }
  0x3b   :  { %1127 = shalt.err (!%p1124_p12)
}
  0x3c   :  { %s1128_s26 = scalar_lea.vmem %s61_s19, 1024  ;;  %p1133_p0 = scmp.lt.s32.totalorder %s61_s19, %s61_s19 }
  0x3d   :  { %p1129_p13 = scmp.ne.s32.totalorder %s61_s19, %s1128_s26  ;;  %p1134_p1 = scmp.lt.s32.totalorder %s1128_s26, %s1128_s26 }
  0x3f   :  { %p1135_p2 = por %p1134_p1, %p1133_p0 }
  0x41   :  { %p1136_p3 = pnand %p1135_p2, %p1129_p13 }
  0x43   :  { %1139 = shalt.err (!%p1136_p3)
}
  0x44   :  { %66 = dma.hbm_to_vmem [thread:$0]  %s1267_s5, 1024, %s61_s19, [#allocation8], %s1153_s0, %s1153_s0, %s1154_s15  }
  0x45   :  { %1140 = dma.done.wait [#allocation3], 768  }
  0x46   :  { %1141 = vsyncadd [#allocation3], 4294966528 }
  0x47   :  { %1142 = dma.done.wait [#allocation5], 8192  }
  0x48   :  { %1143 = vsyncadd [#allocation5], 4294959104 }
  0x49   :  { %1144 = dma.done.wait [#allocation8], 1024  }
  0x4a   :  { %1145 = vsyncadd [#allocation8], 4294966272  ;;  %v948_v0 = vld [vmem:[#allocation4 + $0x4] ss:$8 sps:$4 sm:$0xff]   ;;  %v950_v1 = vld [vmem:[#allocation4] ss:$8 sps:$4 sm:$0xff]  }
  0x4b   :  { %391 = vmatprep.subr.bf16.mxu0 %v948_v0  ;;  %v951_v2 = vld [vmem:[#allocation4 + $0x14] ss:$8 sps:$4 sm:$0xff]   ;;  %v953_v3 = vld [vmem:[#allocation4 + $0x10] ss:$8 sps:$4 sm:$0xff]   ;;  %v954_v4 = vld [vmem:[#allocation4 + $0x24] ss:$8 sps:$4 sm:$0xff]  }
  0x4c   :  { %392 = vmatpush1.bf16.msra.mxu0 %v950_v1  ;;  %v956_v5 = vld [vmem:[#allocation4 + $0x20] ss:$8 sps:$4 sm:$0xff]   ;;  %v957_v6 = vld [vmem:[#allocation4 + $0x34] ss:$8 sps:$4 sm:$0xff]   ;;  %v959_v7 = vld [vmem:[#allocation4 + $0x30] ss:$8 sps:$4 sm:$0xff]  }
  0x4d   :  { %393 = vmatprep.subr.bf16.mxu0 %v951_v2  ;;  %v960_v8 = vld [vmem:[#allocation4 + $0x44] ss:$8 sps:$4 sm:$0xff]   ;;  %v962_v9 = vld [vmem:[#allocation4 + $0x40] ss:$8 sps:$4 sm:$0xff]   ;;  %v963_v10 = vld [vmem:[#allocation4 + $0x54] ss:$8 sps:$4 sm:$0xff]  }
  0x4e   :  { %v965_v11 = vld [vmem:[#allocation4 + $0x50] ss:$8 sps:$4 sm:$0xff]   ;;  %v966_v12 = vld [vmem:[#allocation4 + $0x64] ss:$8 sps:$4 sm:$0xff]   ;;  %v968_v16 = vld [vmem:[#allocation4 + $0x60] ss:$8 sps:$4 sm:$0xff]  }
  0x4f   :  { %v83_v13 = vld [vmem:[#allocation2 + $0x8] sm:$0xff]  ;;  %v86_v14 = vld [vmem:[#allocation2 + $0x20] sm:$0xff]  ;;  %v972_v19 = vld [vmem:[#allocation4 + $0x84] ss:$8 sps:$4 sm:$0xff]   ;;  %v1156_v53 = vmov 0   ;;  %vm1158_vm0 = vmmov 0  }
  0x50   :  { %394 = vmatpush1.bf16.msra.mxu0 %v953_v3  ;;  %v89_v15 = vpack.c.bf16 %v86_v14, %v83_v13  ;;  %v969_v17 = vld [vmem:[#allocation4 + $0x74] ss:$8 sps:$4 sm:$0xff]   ;;  %v971_v18 = vld [vmem:[#allocation4 + $0x70] ss:$8 sps:$4 sm:$0xff]   ;;  %v974_v20 = vld [vmem:[#allocation4 + $0x80] ss:$8 sps:$4 sm:$0xff]  }
  0x51   :  { %395 = vmatprep.subr.bf16.mxu0 %v954_v4  ;;  %v975_v21 = vld [vmem:[#allocation4 + $0x94] ss:$8 sps:$4 sm:$0xff]   ;;  %v977_v22 = vld [vmem:[#allocation4 + $0x90] ss:$8 sps:$4 sm:$0xff]   ;;  %v978_v23 = vld [vmem:[#allocation4 + $0xa4] ss:$8 sps:$4 sm:$0xff]  }
  0x52   :  { %423 = vmatprep.mubr.bf16.mxu0 %v89_v15  ;;  %v1020_v24 = vld [vmem:[#allocation6 + $0x40] sm:$0xff]   ;;  %v1022_v26 = vld [vmem:[#allocation6 + $0x48] sm:$0xff]   ;;  %v1024_v28 = vld [vmem:[#allocation6 + $0x50] sm:$0xff]   ;;  %vm792_vm1 = vcmask 64512  }
  0x53   :  { %v1021_v25 = vld [vmem:[#allocation6] sm:$0xff]   ;;  %876 = vmatprep.subr.bf16.mxu1 %v1020_v24  ;;  %v1023_v27 = vld [vmem:[#allocation6 + $0x8] sm:$0xff]   ;;  %v981_v30 = vld [vmem:[#allocation4 + $0xb4] ss:$8 sps:$4 sm:$0xff]  }
  0x54   :  { %396 = vmatpush1.bf16.msra.mxu0 %v956_v5  ;;  %877 = vmatpush3.bf16.msra.mxu1 %v1021_v25  ;;  %v980_v29 = vld [vmem:[#allocation4 + $0xa0] ss:$8 sps:$4 sm:$0xff]   ;;  %v983_v31 = vld [vmem:[#allocation4 + $0xb0] ss:$8 sps:$4 sm:$0xff]   ;;  %v984_v34 = vld [vmem:[#allocation4 + $0xc4] ss:$8 sps:$4 sm:$0xff]  }
  0x55   :  { %397 = vmatprep.subr.bf16.mxu0 %v957_v6  ;;  %878 = vmatprep.subr.bf16.mxu1 %v1022_v26  ;;  %v1025_v32 = vld [vmem:[#allocation6 + $0x10] sm:$0xff]   ;;  %v1026_v33 = vld [vmem:[#allocation6 + $0x58] sm:$0xff]   ;;  %v986_v36 = vld [vmem:[#allocation4 + $0xc0] ss:$8 sps:$4 sm:$0xff]  }
  0x56   :  { %v1027_v35 = vld [vmem:[#allocation6 + $0x18] sm:$0xff]   ;;  %v1028_v37 = vld [vmem:[#allocation6 + $0x60] sm:$0xff]   ;;  %v1030_v40 = vld [vmem:[#allocation6 + $0x68] sm:$0xff]  }
  0x57   :  { %v987_v38 = vld [vmem:[#allocation4 + $0xd4] ss:$8 sps:$4 sm:$0xff]   ;;  %v1029_v39 = vld [vmem:[#allocation6 + $0x20] sm:$0xff]   ;;  %v989_v41 = vld [vmem:[#allocation4 + $0xd0] ss:$8 sps:$4 sm:$0xff]  }
  0x58   :  { %398 = vmatpush1.bf16.msra.mxu0 %v959_v7  ;;  %879 = vmatpush3.bf16.msra.mxu1 %v1023_v27  ;;  %v990_v42 = vld [vmem:[#allocation4 + $0xe4] ss:$8 sps:$4 sm:$0xff]   ;;  %v992_v43 = vld [vmem:[#allocation4 + $0xe0] ss:$8 sps:$4 sm:$0xff]   ;;  %v993_v44 = vld [vmem:[#allocation4 + $0xf4] ss:$8 sps:$4 sm:$0xff]  }
  0x59   :  { %399 = vmatprep.subr.bf16.mxu0 %v960_v8  ;;  %880 = vmatprep.subr.bf16.mxu1 %v1024_v28  ;;  %v995_v45 = vld [vmem:[#allocation4 + $0xf0] ss:$8 sps:$4 sm:$0xff]   ;;  %v85_v47 = vld [vmem:[#allocation2 + $0x18] sm:$0xff]  ;;  %v1001_v51 = vld [vmem:[#allocation4 + $0x114] ss:$8 sps:$4 sm:$0xff]  }
  0x5a   :  { %v82_v46 = vld [vmem:[#allocation2] sm:$0xff]  ;;  %v998_v48 = vld [vmem:[#allocation4 + $0x104] ss:$8 sps:$4 sm:$0xff]   ;;  %v996_v50 = vld [vmem:[#allocation4 + $0x100] ss:$8 sps:$4 sm:$0xff]  }
  0x5b   :  { %v88_v49 = vpack.c.bf16 %v85_v47, %v82_v46  ;;  %v999_v52 = vld [vmem:[#allocation4 + $0x110] ss:$8 sps:$4 sm:$0xff]   ;;  %v1004_v54 = vld [vmem:[#allocation4 + $0x124] ss:$8 sps:$4 sm:$0xff]   ;;  %v1002_v55 = vld [vmem:[#allocation4 + $0x120] ss:$8 sps:$4 sm:$0xff]  }
  0x5c   :  { %400 = vmatpush1.bf16.msra.mxu0 %v962_v9  ;;  %881 = vmatpush3.bf16.msra.mxu1 %v1025_v32  ;;  %v1007_v56 = vld [vmem:[#allocation4 + $0x134] ss:$8 sps:$4 sm:$0xff]   ;;  %v1005_v57 = vld [vmem:[#allocation4 + $0x130] ss:$8 sps:$4 sm:$0xff]   ;;  %v1010_v58 = vld [vmem:[#allocation4 + $0x144] ss:$8 sps:$4 sm:$0xff]  }
  0x5d   :  { %401 = vmatprep.subr.bf16.mxu0 %v963_v10  ;;  %882 = vmatprep.subr.bf16.mxu1 %v1026_v33  ;;  %v1008_v59 = vld [vmem:[#allocation4 + $0x140] ss:$8 sps:$4 sm:$0xff]   ;;  %v1013_v60 = vld [vmem:[#allocation4 + $0x154] ss:$8 sps:$4 sm:$0xff]   ;;  %v1011_v61 = vld [vmem:[#allocation4 + $0x150] ss:$8 sps:$4 sm:$0xff]  }
  0x5e   :  { %v1016_v62 = vld [vmem:[#allocation4 + $0x164] ss:$8 sps:$4 sm:$0xff]   ;;  %v1014_v63 = vld [vmem:[#allocation4 + $0x160] ss:$8 sps:$4 sm:$0xff]   ;;  %v1019_v0 = vld [vmem:[#allocation4 + $0x174] ss:$8 sps:$4 sm:$0xff]  }
  0x5f   :  { %v1017_v1 = vld [vmem:[#allocation4 + $0x170] ss:$8 sps:$4 sm:$0xff]   ;;  %v84_v2 = vld [vmem:[#allocation2 + $0x10] sm:$0xff]  ;;  %v1031_v5 = vld [vmem:[#allocation6 + $0x28] sm:$0xff]   ;;  %v1157_v10 = vmov 0.0  }
  0x60   :  { %402 = vmatpush1.bf16.msra.mxu0 %v965_v11  ;;  %883 = vmatpush3.bf16.msra.mxu1 %v1027_v35  ;;  %v87_v3 = vld [vmem:[#allocation2 + $0x28] sm:$0xff]  ;;  %v1032_v6 = vld [vmem:[#allocation6 + $0x70] sm:$0xff]   ;;  %v141_v11 = vlaneseq  ;;  %v1036_v32 = vld [vmem:[#allocation7] sm:$0xff]  }
  0x61   :  { %403 = vmatprep.subr.bf16.mxu0 %v966_v12  ;;  %884 = vmatprep.subr.bf16.mxu1 %v1028_v37  ;;  %v90_v4 = vpack.c.bf16 %v87_v3, %v84_v2  ;;  %v1033_v7 = vld [vmem:[#allocation6 + $0x30] sm:$0xff]   ;;  %v1034_v8 = vld [vmem:[#allocation6 + $0x78] sm:$0xff]   ;;  %v1037_v33 = vld [vmem:[#allocation7 + $0x8] sm:$0xff]  }
  0x62   :  { %v1035_v9 = vld [vmem:[#allocation6 + $0x38] sm:$0xff]   ;;  %v142_v12 = vshrl.u32 %v141_v11, 7  ;;  %v139_v14 = vld [vmem:[%s1264_s2] sm:$0x3]  ;;  %v1041_v37 = vld [vmem:[#allocation7 + $0x28] sm:$0xff]  }
  0x63   :  { %v1039_v35 = vld [vmem:[#allocation7 + $0x18] sm:$0xff]  }
  0x64   :  { %404 = vmatpush1.bf16.msra.mxu0 %v968_v16  ;;  %885 = vmatpush3.bf16.msra.mxu1 %v1029_v39  ;;  %v143_v13 = vsub.s32 0, %v142_v12  ;;  %v147_v15 = vsub.s32 1, %v142_v12  ;;  %v1043_v39 = vld [vmem:[#allocation7 + $0x38] sm:$0xff]  }
  0x65   :  { %405 = vmatprep.subr.bf16.mxu0 %v969_v17  ;;  %886 = vmatprep.subr.bf16.mxu1 %v1030_v40 }
  0x66   :  { %v144_v16 = vrot.slane %v139_v14, %v143_v13  ;;  %v148_v17 = vrot.slane %v139_v14, %v147_v15 }
  0x68   :  { %406 = vmatpush1.bf16.msra.mxu0 %v971_v18  ;;  %887 = vmatpush3.bf16.msra.mxu1 %v1031_v5 }
  0x69   :  { %407 = vmatprep.subr.bf16.mxu0 %v972_v19  ;;  %888 = vmatprep.subr.bf16.mxu1 %v1032_v6 }
  0x6c   :  { %408 = vmatpush1.bf16.msra.mxu0 %v974_v20  ;;  %889 = vmatpush3.bf16.msra.mxu1 %v1033_v7 }
  0x6d   :  { %409 = vmatprep.subr.bf16.mxu0 %v975_v21  ;;  %890 = vmatprep.subr.bf16.mxu1 %v1034_v8 }
  0x70   :  { %410 = vmatpush1.bf16.msra.mxu0 %v977_v22  ;;  %891 = vmatpush3.bf16.msra.mxu1 %v1035_v9 }
  0x71   :  { %411 = vmatprep.subr.bf16.mxu0 %v978_v23  ;;  %907 = vmatprep.subr.bf16.mxu1 %v1157_v10 }
  0x74   :  { %412 = vmatpush1.bf16.msra.mxu0 %v980_v29 }
  0x75   :  { %413 = vmatprep.subr.bf16.mxu0 %v981_v30 }
  0x78   :  { %414 = vmatpush1.bf16.msra.mxu0 %v983_v31 }
  0x79   :  { %415 = vmatprep.subr.bf16.mxu0 %v984_v34  ;;  %v1038_v34 = vld [vmem:[#allocation7 + $0x10] sm:$0xff]  }
  0x7c   :  { %416 = vmatpush1.bf16.msra.mxu0 %v986_v36  ;;  %v1040_v36 = vld [vmem:[#allocation7 + $0x20] sm:$0xff]  }
  0x7d   :  { %417 = vmatprep.subr.bf16.mxu0 %v987_v38  ;;  %v1042_v38 = vld [vmem:[#allocation7 + $0x30] sm:$0xff]  }
  0x80   :  { %418 = vmatpush1.bf16.msra.mxu0 %v989_v41  ;;  %v850_v41 = vld [vmem:[%s1266_s4] ss:$0 sm:$0xff] }
  0x81   :  { %419 = vmatprep.subr.bf16.mxu0 %v990_v42 }
  0x84   :  { %420 = vmatpush1.bf16.msra.mxu0 %v992_v43 }
  0x85   :  { %421 = vmatprep.subr.bf16.mxu0 %v993_v44 }
  0x88   :  { %422 = vmatpush1.bf16.msra.mxu0 %v995_v45 }
  0x89   :  { %434 = vmatprep.subr.bf16.mxu0 %v998_v48 }
  0x8b   :  { %424 = vmatmul.mubr.bf16.vlgmr.msra.gmra.mrb[0].mxu0 %v88_v49 }
  0x8c   :  { %435 = vmatpush1.bf16.msra.mxu0 %v996_v50  ;;  %466 = vmatprep.mubr.bf16.mxu0 %v1156_v53 }
  0x8d   :  { %436 = vmatprep.subr.bf16.mxu0 %v1001_v51 }
  0x90   :  { %437 = vmatpush1.bf16.msra.mxu0 %v999_v52  ;;  %v867_v52 = vld [vmem:[%s1268_s6] ss:$0 sm:$0xff] }
  0x91   :  { %438 = vmatprep.subr.bf16.mxu0 %v1004_v54 }
  0x94   :  { %439 = vmatpush1.bf16.msra.mxu0 %v1002_v55 }
  0x95   :  { %440 = vmatprep.subr.bf16.mxu0 %v1007_v56 }
  0x98   :  { %441 = vmatpush1.bf16.msra.mxu0 %v1005_v57 }
  0x99   :  { %442 = vmatprep.subr.bf16.mxu0 %v1010_v58 }
  0x9c   :  { %443 = vmatpush1.bf16.msra.mxu0 %v1008_v59 }
  0x9d   :  { %444 = vmatprep.subr.bf16.mxu0 %v1013_v60 }
  0xa0   :  { %445 = vmatpush1.bf16.msra.mxu0 %v1011_v61 }
  0xa1   :  { %446 = vmatprep.subr.bf16.mxu0 %v1016_v62 }
  0xa4   :  { %447 = vmatpush1.bf16.msra.mxu0 %v1014_v63 }
  0xa5   :  { %448 = vmatprep.subr.bf16.mxu0 %v1019_v0 }
  0xa8   :  { %449 = vmatpush1.bf16.msra.mxu0 %v1017_v1 }
  0xab   :  { %467 = vmatmul.mubr.bf16.vlgmr.msra.gmra.mrb[0].mxu0 %v90_v4 }
 0x17e   :  { %v468_v18 = vpop.f32.mrb[0].mxu0 }
 0x17f   :  { %v927_v19 = vadd.f32 %v468_v18, %v144_v16  ;;  %v470_v20 = vpop.f32.mrb[1].mxu0 }
 0x180   :  { %v928_v21 = vadd.f32 %v470_v20, %v148_v17  ;;  %v472_v22 = vpop.f32.mrb[2].mxu0 }
 0x181   :  { %v929_v23 = vadd.f32 %v472_v22, %v144_v16  ;;  %v474_v24 = vpop.f32.mrb[3].mxu0  ;;  %v477_v26 = vmax.f32 %v927_v19, 0.0 }
 0x182   :  { %v930_v25 = vadd.f32 %v474_v24, %v148_v17  ;;  %v478_v28 = vmax.f32 %v928_v21, 0.0 }
 0x183   :  { %v479_v27 = vmax.f32 %v929_v23, 0.0 }
 0x184   :  { %v480_v29 = vmax.f32 %v930_v25, 0.0 }
 0x185   :  { %v481_v30 = vpack.c.bf16 %v479_v27, %v477_v26 }
 0x186   :  { %v482_v31 = vpack.c.bf16 %v480_v29, %v478_v28 }
 0x188   :  { %650 = vmatprep.mubr.bf16.mxu1 %v482_v31 }
 0x189   :  { %651 = vmatmul.mubr.bf16.vlgmr.msra.gmra.mrb[0].mxu1 %v481_v30 }
 0x18a   :  { %908 = vmatpush3.bf16.msra.mxu1 %v1036_v32  ;;  %923 = vmatprep.mubr.msk.bf16.mxu1 %vm1158_vm0, %v1157_v10 }
 0x18b   :  { %909 = vmatprep.subr.bf16.mxu1 %v1157_v10 }
 0x18e   :  { %910 = vmatpush3.bf16.msra.mxu1 %v1037_v33 }
 0x18f   :  { %911 = vmatprep.subr.bf16.mxu1 %v1157_v10 }
 0x192   :  { %912 = vmatpush3.bf16.msra.mxu1 %v1038_v34 }
 0x193   :  { %913 = vmatprep.subr.bf16.mxu1 %v1157_v10 }
 0x196   :  { %914 = vmatpush3.bf16.msra.mxu1 %v1039_v35 }
 0x197   :  { %915 = vmatprep.subr.bf16.mxu1 %v1157_v10 }
 0x19a   :  { %916 = vmatpush3.bf16.msra.mxu1 %v1040_v36 }
 0x19b   :  { %917 = vmatprep.subr.bf16.mxu1 %v1157_v10 }
 0x19e   :  { %918 = vmatpush3.bf16.msra.mxu1 %v1041_v37 }
 0x19f   :  { %919 = vmatprep.subr.bf16.mxu1 %v1157_v10 }
 0x1a2   :  { %920 = vmatpush3.bf16.msra.mxu1 %v1042_v38 }
 0x1a3   :  { %921 = vmatprep.subr.bf16.mxu1 %v1157_v10 }
 0x1a6   :  { %922 = vmatpush3.bf16.msra.mxu1 %v1043_v39 }
 0x25c   :  { %v892_v40 = vpop.f32.mrb[0].mxu1 }
 0x25d   :  { %v893_v42 = vpop.f32.mrb[1].mxu1 }
 0x25e   :  { %v894_v43 = vadd.f32 %v893_v42, %v892_v40  ;;  %v895_v44 = vpop.f32.mrb[2].mxu1 }
 0x25f   :  { %v896_v45 = vpop.f32.mrb[3].mxu1 }
 0x260   :  { %v653_v46 = vadd.f32 %v894_v43, %v850_v41  ;;  %v897_v47 = vadd.f32 %v896_v45, %v895_v44 }
 0x262   :  { %v656_v48 = vadd.f32 %v897_v47, %v850_v41  ;;  %v659_v49 = vmax.f32 %v653_v46, 0.0 }
 0x264   :  { %v660_v50 = vmax.f32 %v656_v48, 0.0 }
 0x266   :  { %v661_v51 = vpack.c.bf16 %v660_v50, %v659_v49 }
 0x268   :  { %924 = vmatmul.mubr.bf16.vlgmr.msra.gmra.mrb[4].mxu1 %v661_v51 }
 0x33b   :  { %v767_v53 = vpop.f32.mrb[4].mxu1 }
 0x33c   :  { %v768_v54 = vadd.f32 %v867_v52, %v767_v53  ;;  %v925_v55 = vpop.f32.mrb[5].mxu1 }
 0x33d   :  { %v770_v56 = vpop.f32.mrb[6].mxu1 }
 0x33e   :  { %774 = vmax.xlane.f32.xlu0 %v768_v54  ;;  %v926_v57 = vpop.f32.mrb[7].mxu1  ;;  %v771_v58 = vadd.f32 %v867_v52, %v770_v56 }
 0x342   :  { %776 = vmax.xlane.f32.xlu0 %v771_v58 }
 0x3cb   :  { %v775_v59 = vpop.xlane.xlu0 %774 }
 0x3cc   :  { %v778_v60 = vsub.f32 %v768_v54, %v775_v59 }
 0x3ce   :  { %v780_v61 = vmul.f32 1.442695, %v778_v60 }
 0x3cf   :  { %v777_v62 = vpop.xlane.xlu0 %776 }
 0x3d0   :  { %1044 = vpow2.f32 %v780_v61  ;;  %v779_v63 = vsub.f32 %v771_v58, %v777_v62 }
 0x3d2   :  { %v782_v0 = vmul.f32 1.442695, %v779_v63 }
 0x3d4   :  { %1046 = vpow2.f32 %v782_v0 }
 0x3da   :  { %v1045_v1 = vpop.eup %1044 }
 0x3db   :  { %784 = vadd.xlane.f32.xlu1 %v1045_v1 }
 0x3de   :  { %v1047_v2 = vpop.eup %1046 }
 0x3df   :  { %786 = vadd.xlane.f32.xlu1 %v1047_v2 }
 0x468   :  { %v785_v3 = vpop.xlane.xlu1 %784 }
 0x469   :  { %1048 = vrcp.f32 %v785_v3 }
 0x46c   :  { %v787_v4 = vpop.xlane.xlu1 %786 }
 0x46d   :  { %1050 = vrcp.f32 %v787_v4 }
 0x473   :  { %v1049_v5 = vpop.eup %1048 }
 0x474   :  { %v789_v6 = vmul.f32 %v1049_v5, %v1045_v1 }
 0x476   :  { %793 = vst.msk [vmem:[%s1269_s7] sm:$0xff] %vm792_vm1, %v789_v6 }
 0x477   :  { %v1051_v7 = vpop.eup %1050 }
 0x478   :  { %v791_v8 = vmul.f32 %v1051_v7, %v1047_v2 }
 0x47a   :  { %794 = vst.msk [vmem:[%s1269_s7 + $0x8] sm:$0xff] %vm792_vm1, %v791_v8 }
 0x47b   :  { %799 = vsyncpa [#allocation3], 1 }
 0x47c   :  { %800 = vsyncpa [#allocation5], 1 }
 0x47d   :  { %801 = vsyncpa [#allocation8], 1 }

</bundles_post_ra>
